<compile_context>
chip_gen: v5e
topology: v5e:2x2
jax: 0.10.0
libtpu: 0.0.40
codegen_flags: <defaults>
</compile_context>

<pallas_src>
import jax
import jax.numpy as jnp
from jax.experimental import pallas as pl
from jax.experimental.pallas import tpu as pltpu

BN_EPS = 1e-5


def _round_up(x, m):
    return ((x + m - 1) // m) * m


# ------------------------------ Pallas kernel ------------------------------ #
def _make_fused_kernel(inv_m1, inv_m2):
    def kernel(x_ref, w1_ref, g1_ref, be1_ref, m1s_ref, m1b_ref,
               p_ref, rm_ref,
               w2_ref, g2_ref, be2_ref, m2s_ref, m2b_ref,
               wd_ref, btw_ref, o_ref):
        f32 = jnp.float32
        bf16 = jnp.bfloat16

        def bn_relu(a, row_mask, msum, mbcast, g, be, inv_m):
            # Training-mode BatchNorm (biased variance) fused to scale/shift,
            # computed once over the whole M-stacked slab.  `a`'s padded lanes
            # are exactly 0; `row_mask` (if given) zeroes invalid rows out of
            # the statistics only.
            am = a if row_mask is None else a * row_mask
            csum = jnp.sum(am, axis=0, keepdims=True)               # (1, L)
            csq = jnp.sum(am * a, axis=0, keepdims=True)            # (1, L)
            stats = jnp.concatenate([csum, csq], axis=0)            # (2, L)
            mom = jnp.dot(stats, msum, preferred_element_type=f32) * inv_m   # (2, C)
            mean = mom[0:1, :]
            var = mom[1:2, :] - mean * mean
            scale = g * jax.lax.rsqrt(var + BN_EPS)                 # (1, C)
            shift = be - mean * scale
            wide = jnp.dot(jnp.concatenate([scale, shift], axis=0), mbcast,
                           preferred_element_type=f32)              # (2, L)
            return jnp.maximum(a * wide[0:1, :] + wide[1:2, :], 0.0)

        # ---- Conv2d(Cin, F, 3): one MXU matmul (K-folded row taps) ----
        a1 = jnp.dot(x_ref[...], w1_ref[...], preferred_element_type=f32)
        h1 = bn_relu(a1, None, m1s_ref[...], m1b_ref[...],
                     g1_ref[...], be1_ref[...], inv_m1)              # (M, L1) f32

        # ---- Conv2d(F, Cout, 3): fold the ki row-shift into K ----
        # Row shifts via tiny eye(k=1/2) matmuls (MXU slot is idle); the
        # shifted-in garbage only lands on rows that are dropped later.
        s1 = jnp.dot(p_ref[0], h1, preferred_element_type=f32)
        s2 = jnp.dot(p_ref[1], h1, preferred_element_type=f32)
        lhs2 = jnp.concatenate([h1, s1, s2], axis=1).astype(bf16)    # (M, 3*L1)
        a2 = jnp.dot(lhs2, w2_ref[...], preferred_element_type=f32)  # (M, L2)
        h2 = bn_relu(a2, rm_ref[...], m2s_ref[...], m2b_ref[...],
                     g2_ref[...], be2_ref[...], inv_m2)

        # ---- ConvTranspose2d(Cout, Cout, 2, stride=2) + bias + ReLU ----
        # Stride-2 phase interleave is baked into wd's column layout -> one
        # dense, lane-aligned (384-lane) store.
        y = jnp.dot(h2.astype(bf16), wd_ref[...],
                    preferred_element_type=f32) + btw_ref[...]
        o_ref[...] = jnp.maximum(y, 0.0)

    return kernel


# -------------------- weight/layout preparation (glue) ---------------------- #
def _conv_row_block_weights(w_oikk, w_in):
    """Per row-offset ki: a (w_in*I, w_out*O) matrix folding the kj shift and
    channel contraction of a no-padding / stride-1 conv into one matmul."""
    O, I, kh, kw = w_oikk.shape
    w_out = w_in - kw + 1
    blocks = []
    for ki in range(kh):
        blk = jnp.zeros((w_in, I, w_out, O), jnp.float32)
        for kj in range(kw):
            shift = jnp.eye(w_in, w_out, k=-kj, dtype=jnp.float32)  # [w,wo]=1 iff w==wo+kj
            blk = blk + jnp.einsum("wv,io->wivo", shift, w_oikk[:, :, ki, kj].T)
        blocks.append(blk.reshape(w_in * I, w_out * O))
    return jnp.stack(blocks, axis=0)                                 # (kh, w_in*I, w_out*O)


def _fold_banded(blocks, k_stride, n_pad):
    """Fold the ki blocks along K (block ki lives at rows [ki*k_stride, ...))
    and zero-pad the output lanes to n_pad."""
    kh, kb, nb = blocks.shape
    out = jnp.zeros((kh * k_stride, n_pad), jnp.float32)
    for ki in range(kh):
        out = out.at[ki * k_stride: ki * k_stride + kb, :nb].set(blocks[ki])
    return out


def _deconv_full_weight(wt_iokk, w_in):
    """(w_in*Ci, kh*kw*w_in*Co) matrix for ConvTranspose2d(k=2, s=2) whose
    columns are laid out as (ki, 2*w+kj, o): the stride-2 phase interleave is
    pre-applied, so the kernel's output slab reshapes to NHWC for free."""
    Ci, Co, kh, kw = wt_iokk.shape
    halves = []
    for ki in range(kh):
        blk = jnp.zeros((w_in, Ci, kw * w_in, Co), jnp.float32)
        for kj in range(kw):
            scatter = jnp.zeros((w_in, kw * w_in), jnp.float32)
            scatter = scatter.at[jnp.arange(w_in), kw * jnp.arange(w_in) + kj].set(1.0)
            blk = blk + jnp.einsum("wv,io->wivo", scatter, wt_iokk[:, :, ki, kj])
        halves.append(blk.reshape(w_in * Ci, kw * w_in * Co))
    return jnp.concatenate(halves, axis=1)                           # (w_in*Ci, 4*w_in*Co)


def _channel_sum_mask(width, channels, lanes):
    # mask[w*C + c, c'] = (c == c'); zero rows on the padded lanes.
    m = jnp.tile(jnp.eye(channels, dtype=jnp.float32), (width, 1))   # (width*C, C)
    return jnp.zeros((lanes, channels), jnp.float32).at[: width * channels].set(m)


# --------------------------------- wrapper ---------------------------------- #
def unet_encoder_forward(x_nchw, params):
    """Pallas TPU implementation of UNetEncoder.forward (PyTorch training-mode BN)."""
    w1, b1, g1, be1, w2, b2, g2, be2, wt, bt = params
    # Conv biases are exactly cancelled by training-mode BN mean subtraction.
    del b1, b2

    N, Cin, H, W = x_nchw.shape
    F = w1.shape[0]
    Cout = w2.shape[0]
    H1, W1 = H - 2, W - 2
    H2, W2 = H1 - 2, W1 - 2
    L1 = _round_up(W1 * F, 128)       # lane-padded width of the conv1/h1 slab
    L2 = _round_up(W2 * Cout, 128)    # lane-padded width of the conv2/h2 slab
    M = N * H1                        # stacked rows carried through all stages
    bf16 = jnp.bfloat16

    # NCHW -> row-major image rows, K-folded over the 3 row taps of conv1.
    # (At production W, do this fold in-kernel from raw rows to keep input DMA
    # at raw bytes; keeping the model NHWC end-to-end would also drop the two
    # wrapper transposes.)
    x3 = jnp.transpose(x_nchw, (0, 2, 3, 1)).reshape(N, H, W * Cin)
    lhs1 = jnp.concatenate([x3[:, ki:ki + H1, :] for ki in range(3)], axis=2)
    lhs1 = lhs1.reshape(M, 3 * W * Cin).astype(bf16)

    # Banded, K-folded, lane-padded weights (bf16 for the MXU).
    w1f = _fold_banded(_conv_row_block_weights(w1, W), W * Cin, L1).astype(bf16)   # (3*W*Cin, L1)
    w2f = _fold_banded(_conv_row_block_weights(w2, W1), L1, L2).astype(bf16)       # (3*L1,   L2)
    wdf = _deconv_full_weight(wt, W2)                                              # (W2*Cout, 4*W2*Cout)
    wdp = jnp.zeros((L2, 4 * W2 * Cout), jnp.float32).at[: W2 * Cout].set(wdf).astype(bf16)
    btw = jnp.tile(bt, 4 * W2).reshape(1, -1).astype(jnp.float32)                  # (1, 4*W2*Cout)

    # BN channel-stat / broadcast masks; padded lanes are zero on both sides so
    # padded activations stay exactly 0 through scale/shift + ReLU.
    m1s = _channel_sum_mask(W1, F, L1)
    m2s = _channel_sum_mask(W2, Cout, L2)
    m1b, m2b = m1s.T, m2s.T

    # Row-shift matrices (fold ki into K for conv2) and BN2 row-validity mask.
    pshift = jnp.stack([jnp.eye(M, M, k=1, dtype=jnp.float32),
                        jnp.eye(M, M, k=2, dtype=jnp.float32)], axis=0)
    rmask = ((jnp.arange(M) % H1) < H2).astype(jnp.float32).reshape(M, 1)

    kernel = _make_fused_kernel(1.0 / (N * H1 * W1), 1.0 / (N * H2 * W2))
    vmem = pl.BlockSpec(memory_space=pltpu.MemorySpace.VMEM)
    out = pl.pallas_call(
        kernel,
        out_shape=jax.ShapeDtypeStruct((M, 4 * W2 * Cout), jnp.float32),
        in_specs=[vmem] * 15,
        out_specs=vmem,
        compiler_params=pltpu.CompilerParams(vmem_limit_bytes=32 * 1024 * 1024),
    )(lhs1, w1f, g1.reshape(1, -1).astype(jnp.float32), be1.reshape(1, -1).astype(jnp.float32),
      m1s, m1b, pshift, rmask,
      w2f, g2.reshape(1, -1).astype(jnp.float32), be2.reshape(1, -1).astype(jnp.float32),
      m2s, m2b, wdp, btw)

    # Rows r in [H2, H1) of each image are dead (cross-image shift garbage):
    # drop them, then the (ki, 2w+kj, c) deconv column layout is exactly NHWC.
    y = out.reshape(N, H1, 2, 2 * W2, Cout)[:, :H2]
    y = y.reshape(N, 2 * H2, 2 * W2, Cout)
    return jnp.transpose(y, (0, 3, 1, 2))


# --------------------------- pure-JAX reference ----------------------------- #
def _ref_forward(x, params):
    w1, b1, g1, be1, w2, b2, g2, be2, wt, bt = params

    def conv(xx, w, b):
        N, C, H, W = xx.shape
        O, _, kh, kw = w.shape
        Ho, Wo = H - kh + 1, W - kw + 1
        out = jnp.zeros((N, O, Ho, Wo), jnp.float32)
        for ki in range(kh):
            for kj in range(kw):
                out = out + jnp.einsum(
                    "nchw,oc->nohw", xx[:, :, ki:ki + Ho, kj:kj + Wo], w[:, :, ki, kj]
                )
        return out + b[None, :, None, None]

    def bn(xx, g, be):
        mean = xx.mean(axis=(0, 2, 3), keepdims=True)
        var = xx.var(axis=(0, 2, 3), keepdims=True)  # biased, like PyTorch training BN
        xhat = (xx - mean) / jnp.sqrt(var + BN_EPS)
        return xhat * g[None, :, None, None] + be[None, :, None, None]

    h = jax.nn.relu(bn(conv(x, w1, b1), g1, be1))
    h = jax.nn.relu(bn(conv(h, w2, b2), g2, be2))
    N, C, H2, W2 = h.shape
    Co = wt.shape[1]
    out = jnp.zeros((N, Co, 2 * H2, 2 * W2), jnp.float32)
    for ki in range(2):
        for kj in range(2):
            out = out.at[:, :, ki::2, kj::2].set(
                jnp.einsum("nchw,co->nohw", h, wt[:, :, ki, kj])
            )
    return jax.nn.relu(out + bt[None, :, None, None])


# ---------------------------------- main ------------------------------------ #
if __name__ == "__main__":
    # Shapes consistent with the module: in_channels=4, features=8, out_channels=8.
    N, Cin, H, W = 2, 4, 16, 16
    F, Cout = 8, 8

    key = jax.random.PRNGKey(0)
    ks = jax.random.split(key, 8)
    x = jax.random.normal(ks[0], (N, Cin, H, W), jnp.float32)

    w1 = 0.1 * jax.random.normal(ks[1], (F, Cin, 3, 3), jnp.float32)     # Conv2d (O,I,kh,kw)
    b1 = 0.1 * jax.random.normal(ks[2], (F,), jnp.float32)
    g1 = jnp.ones((F,), jnp.float32)
    be1 = jnp.zeros((F,), jnp.float32)
    w2 = 0.1 * jax.random.normal(ks[3], (Cout, F, 3, 3), jnp.float32)
    b2 = 0.1 * jax.random.normal(ks[4], (Cout,), jnp.float32)
    g2 = jnp.ones((Cout,), jnp.float32)
    be2 = jnp.zeros((Cout,), jnp.float32)
    wt = 0.1 * jax.random.normal(ks[5], (Cout, Cout, 2, 2), jnp.float32)  # ConvT (I,O,kh,kw)
    bt = 0.1 * jax.random.normal(ks[6], (Cout,), jnp.float32)

    params = (w1, b1, g1, be1, w2, b2, g2, be2, wt, bt)

    fwd = jax.jit(unet_encoder_forward)
    y = jax.block_until_ready(fwd(x, params))
    assert y.shape == (N, Cout, 2 * (H - 4), 2 * (W - 4)), y.shape

    y_ref = jax.block_until_ready(_ref_forward(x, params))
    # bf16 MXU operands -> looser tolerance than the pure-f32 variant.
    diff = jnp.abs(y - y_ref)
    tol = 6e-2 + 5e-2 * jnp.abs(y_ref)
    assert bool(jnp.all(diff <= tol)), (
        f"kernel/reference mismatch: max abs err = {float(jnp.max(diff))}")

    print("KERNEL_OK")
</pallas_src>

<mosaic_0001>
module attributes {stable_mosaic.version = 11 : i64} {
  func.func @kernel(%arg0: memref<28x192xbf16, #tpu.memory_space<vmem>>, %arg1: memref<192x128xbf16, #tpu.memory_space<vmem>>, %arg2: memref<1x8xf32, #tpu.memory_space<vmem>>, %arg3: memref<1x8xf32, #tpu.memory_space<vmem>>, %arg4: memref<128x8xf32, #tpu.memory_space<vmem>>, %arg5: memref<8x128xf32, #tpu.memory_space<vmem>>, %arg6: memref<2x28x28xf32, #tpu.memory_space<vmem>>, %arg7: memref<28x1xf32, #tpu.memory_space<vmem>>, %arg8: memref<384x128xbf16, #tpu.memory_space<vmem>>, %arg9: memref<1x8xf32, #tpu.memory_space<vmem>>, %arg10: memref<1x8xf32, #tpu.memory_space<vmem>>, %arg11: memref<128x8xf32, #tpu.memory_space<vmem>>, %arg12: memref<8x128xf32, #tpu.memory_space<vmem>>, %arg13: memref<128x384xbf16, #tpu.memory_space<vmem>>, %arg14: memref<1x384xf32, #tpu.memory_space<vmem>>, %arg15: memref<28x384xf32, #tpu.memory_space<vmem>>) attributes {dimension_semantics = [], scalar_prefetch = 0 : i64, scratch_operands = 0 : i64, tpu.core_type = #tpu.core_type<tc>} {
    %c0 = arith.constant 0 : index
    %c0_0 = arith.constant 0 : index
    %0 = vector.load %arg0[%c0, %c0_0] : memref<28x192xbf16, #tpu.memory_space<vmem>>, vector<28x192xbf16>
    %c0_1 = arith.constant 0 : index
    %c0_2 = arith.constant 0 : index
    %1 = vector.load %arg1[%c0_1, %c0_2] : memref<192x128xbf16, #tpu.memory_space<vmem>>, vector<192x128xbf16>
    %cst = arith.constant dense<0.000000e+00> : vector<28x128xf32>
    %2 = tpu.matmul %0, %1, %cst {dimension_numbers = #tpu.dot_dimension_numbers<[1], [0], [0], [1], [0, 0, 1, 1], [], []>} : vector<28x192xbf16>, vector<192x128xbf16>, vector<28x128xf32> -> vector<28x128xf32>
    %c0_3 = arith.constant 0 : index
    %c0_4 = arith.constant 0 : index
    %3 = vector.load %arg4[%c0_3, %c0_4] : memref<128x8xf32, #tpu.memory_space<vmem>>, vector<128x8xf32>
    %c0_5 = arith.constant 0 : index
    %c0_6 = arith.constant 0 : index
    %4 = vector.load %arg5[%c0_5, %c0_6] : memref<8x128xf32, #tpu.memory_space<vmem>>, vector<8x128xf32>
    %c0_7 = arith.constant 0 : index
    %c0_8 = arith.constant 0 : index
    %5 = vector.load %arg2[%c0_7, %c0_8] : memref<1x8xf32, #tpu.memory_space<vmem>>, vector<1x8xf32>
    %c0_9 = arith.constant 0 : index
    %c0_10 = arith.constant 0 : index
    %6 = vector.load %arg3[%c0_9, %c0_10] : memref<1x8xf32, #tpu.memory_space<vmem>>, vector<1x8xf32>
    %cst_11 = arith.constant dense<0.000000e+00> : vector<128xf32>
    %7 = vector.multi_reduction <add>, %2, %cst_11 [0] : vector<28x128xf32> to vector<128xf32>
    %8 = vector.shape_cast %7 : vector<128xf32> to vector<1x128xf32>
    %9 = arith.mulf %2, %2 : vector<28x128xf32>
    %cst_12 = arith.constant dense<0.000000e+00> : vector<128xf32>
    %10 = vector.multi_reduction <add>, %9, %cst_12 [0] : vector<28x128xf32> to vector<128xf32>
    %11 = vector.shape_cast %10 : vector<128xf32> to vector<1x128xf32>
    %12 = tpu.concatenate %8, %11 in 0 : vector<1x128xf32>, vector<1x128xf32> -> vector<2x128xf32>
    %cst_13 = arith.constant dense<0.000000e+00> : vector<2x8xf32>
    %13 = tpu.matmul %12, %3, %cst_13 {dimension_numbers = #tpu.dot_dimension_numbers<[1], [0], [0], [1], [0, 0, 1, 1], [], []>} : vector<2x128xf32>, vector<128x8xf32>, vector<2x8xf32> -> vector<2x8xf32>
    %cst_14 = arith.constant 0.00255102036 : f32
    %14 = vector.broadcast %cst_14 : f32 to vector<2x8xf32>
    %15 = arith.mulf %13, %14 : vector<2x8xf32>
    %16 = vector.extract_strided_slice %15 {offsets = [0, 0], sizes = [1, 8], strides = [1, 1]} : vector<2x8xf32> to vector<1x8xf32>
    %17 = vector.extract_strided_slice %15 {offsets = [1, 0], sizes = [1, 8], strides = [1, 1]} : vector<2x8xf32> to vector<1x8xf32>
    %18 = arith.mulf %16, %16 : vector<1x8xf32>
    %19 = arith.subf %17, %18 : vector<1x8xf32>
    %cst_15 = arith.constant 9.99999974E-6 : f32
    %20 = vector.broadcast %cst_15 : f32 to vector<1x8xf32>
    %21 = arith.addf %19, %20 : vector<1x8xf32>
    %22 = math.rsqrt %21 : vector<1x8xf32>
    %23 = arith.mulf %5, %22 : vector<1x8xf32>
    %24 = arith.mulf %16, %23 : vector<1x8xf32>
    %25 = arith.subf %6, %24 : vector<1x8xf32>
    %26 = tpu.concatenate %23, %25 in 0 : vector<1x8xf32>, vector<1x8xf32> -> vector<2x8xf32>
    %cst_16 = arith.constant dense<0.000000e+00> : vector<2x128xf32>
    %27 = tpu.matmul %26, %4, %cst_16 {dimension_numbers = #tpu.dot_dimension_numbers<[1], [0], [0], [1], [0, 0, 1, 1], [], []>} : vector<2x8xf32>, vector<8x128xf32>, vector<2x128xf32> -> vector<2x128xf32>
    %28 = vector.extract_strided_slice %27 {offsets = [0, 0], sizes = [1, 128], strides = [1, 1]} : vector<2x128xf32> to vector<1x128xf32>
    %29 = vector.broadcast %28 : vector<1x128xf32> to vector<28x128xf32>
    %30 = arith.mulf %2, %29 : vector<28x128xf32>
    %31 = vector.extract_strided_slice %27 {offsets = [1, 0], sizes = [1, 128], strides = [1, 1]} : vector<2x128xf32> to vector<1x128xf32>
    %32 = vector.broadcast %31 : vector<1x128xf32> to vector<28x128xf32>
    %33 = arith.addf %30, %32 : vector<28x128xf32>
    %cst_17 = arith.constant 0.000000e+00 : f32
    %34 = vector.broadcast %cst_17 : f32 to vector<28x128xf32>
    %35 = arith.maximumf %33, %34 : vector<28x128xf32>
    %c0_18 = arith.constant 0 : index
    %c0_19 = arith.constant 0 : index
    %c0_20 = arith.constant 0 : index
    %36 = vector.load %arg6[%c0_18, %c0_19, %c0_20] : memref<2x28x28xf32, #tpu.memory_space<vmem>>, vector<1x28x28xf32>
    %37 = vector.shape_cast %36 : vector<1x28x28xf32> to vector<28x28xf32>
    %cst_21 = arith.constant dense<0.000000e+00> : vector<28x128xf32>
    %38 = tpu.matmul %37, %35, %cst_21 {dimension_numbers = #tpu.dot_dimension_numbers<[1], [0], [0], [1], [0, 0, 1, 1], [], []>} : vector<28x28xf32>, vector<28x128xf32>, vector<28x128xf32> -> vector<28x128xf32>
    %c1 = arith.constant 1 : index
    %c0_22 = arith.constant 0 : index
    %c0_23 = arith.constant 0 : index
    %39 = vector.load %arg6[%c1, %c0_22, %c0_23] : memref<2x28x28xf32, #tpu.memory_space<vmem>>, vector<1x28x28xf32>
    %40 = vector.shape_cast %39 : vector<1x28x28xf32> to vector<28x28xf32>
    %cst_24 = arith.constant dense<0.000000e+00> : vector<28x128xf32>
    %41 = tpu.matmul %40, %35, %cst_24 {dimension_numbers = #tpu.dot_dimension_numbers<[1], [0], [0], [1], [0, 0, 1, 1], [], []>} : vector<28x28xf32>, vector<28x128xf32>, vector<28x128xf32> -> vector<28x128xf32>
    %42 = tpu.concatenate %35, %38, %41 in 1 : vector<28x128xf32>, vector<28x128xf32>, vector<28x128xf32> -> vector<28x384xf32>
    %43 = arith.truncf %42 : vector<28x384xf32> to vector<28x384xbf16>
    %c0_25 = arith.constant 0 : index
    %c0_26 = arith.constant 0 : index
    %44 = vector.load %arg8[%c0_25, %c0_26] : memref<384x128xbf16, #tpu.memory_space<vmem>>, vector<384x128xbf16>
    %cst_27 = arith.constant dense<0.000000e+00> : vector<28x128xf32>
    %45 = tpu.matmul %43, %44, %cst_27 {dimension_numbers = #tpu.dot_dimension_numbers<[1], [0], [0], [1], [0, 0, 1, 1], [], []>} : vector<28x384xbf16>, vector<384x128xbf16>, vector<28x128xf32> -> vector<28x128xf32>
    %c0_28 = arith.constant 0 : index
    %c0_29 = arith.constant 0 : index
    %46 = vector.load %arg7[%c0_28, %c0_29] : memref<28x1xf32, #tpu.memory_space<vmem>>, vector<28x1xf32>
    %c0_30 = arith.constant 0 : index
    %c0_31 = arith.constant 0 : index
    %47 = vector.load %arg11[%c0_30, %c0_31] : memref<128x8xf32, #tpu.memory_space<vmem>>, vector<128x8xf32>
    %c0_32 = arith.constant 0 : index
    %c0_33 = arith.constant 0 : index
    %48 = vector.load %arg12[%c0_32, %c0_33] : memref<8x128xf32, #tpu.memory_space<vmem>>, vector<8x128xf32>
    %c0_34 = arith.constant 0 : index
    %c0_35 = arith.constant 0 : index
    %49 = vector.load %arg9[%c0_34, %c0_35] : memref<1x8xf32, #tpu.memory_space<vmem>>, vector<1x8xf32>
    %c0_36 = arith.constant 0 : index
    %c0_37 = arith.constant 0 : index
    %50 = vector.load %arg10[%c0_36, %c0_37] : memref<1x8xf32, #tpu.memory_space<vmem>>, vector<1x8xf32>
    %51 = vector.broadcast %46 : vector<28x1xf32> to vector<28x128xf32>
    %52 = arith.mulf %45, %51 : vector<28x128xf32>
    %cst_38 = arith.constant dense<0.000000e+00> : vector<128xf32>
    %53 = vector.multi_reduction <add>, %52, %cst_38 [0] : vector<28x128xf32> to vector<128xf32>
    %54 = vector.shape_cast %53 : vector<128xf32> to vector<1x128xf32>
    %55 = arith.mulf %52, %45 : vector<28x128xf32>
    %cst_39 = arith.constant dense<0.000000e+00> : vector<128xf32>
    %56 = vector.multi_reduction <add>, %55, %cst_39 [0] : vector<28x128xf32> to vector<128xf32>
    %57 = vector.shape_cast %56 : vector<128xf32> to vector<1x128xf32>
    %58 = tpu.concatenate %54, %57 in 0 : vector<1x128xf32>, vector<1x128xf32> -> vector<2x128xf32>
    %cst_40 = arith.constant dense<0.000000e+00> : vector<2x8xf32>
    %59 = tpu.matmul %58, %47, %cst_40 {dimension_numbers = #tpu.dot_dimension_numbers<[1], [0], [0], [1], [0, 0, 1, 1], [], []>} : vector<2x128xf32>, vector<128x8xf32>, vector<2x8xf32> -> vector<2x8xf32>
    %cst_41 = arith.constant 0.00347222225 : f32
    %60 = vector.broadcast %cst_41 : f32 to vector<2x8xf32>
    %61 = arith.mulf %59, %60 : vector<2x8xf32>
    %62 = vector.extract_strided_slice %61 {offsets = [0, 0], sizes = [1, 8], strides = [1, 1]} : vector<2x8xf32> to vector<1x8xf32>
    %63 = vector.extract_strided_slice %61 {offsets = [1, 0], sizes = [1, 8], strides = [1, 1]} : vector<2x8xf32> to vector<1x8xf32>
    %64 = arith.mulf %62, %62 : vector<1x8xf32>
    %65 = arith.subf %63, %64 : vector<1x8xf32>
    %cst_42 = arith.constant 9.99999974E-6 : f32
    %66 = vector.broadcast %cst_42 : f32 to vector<1x8xf32>
    %67 = arith.addf %65, %66 : vector<1x8xf32>
    %68 = math.rsqrt %67 : vector<1x8xf32>
    %69 = arith.mulf %49, %68 : vector<1x8xf32>
    %70 = arith.mulf %62, %69 : vector<1x8xf32>
    %71 = arith.subf %50, %70 : vector<1x8xf32>
    %72 = tpu.concatenate %69, %71 in 0 : vector<1x8xf32>, vector<1x8xf32> -> vector<2x8xf32>
    %cst_43 = arith.constant dense<0.000000e+00> : vector<2x128xf32>
    %73 = tpu.matmul %72, %48, %cst_43 {dimension_numbers = #tpu.dot_dimension_numbers<[1], [0], [0], [1], [0, 0, 1, 1], [], []>} : vector<2x8xf32>, vector<8x128xf32>, vector<2x128xf32> -> vector<2x128xf32>
    %74 = vector.extract_strided_slice %73 {offsets = [0, 0], sizes = [1, 128], strides = [1, 1]} : vector<2x128xf32> to vector<1x128xf32>
    %75 = vector.broadcast %74 : vector<1x128xf32> to vector<28x128xf32>
    %76 = arith.mulf %45, %75 : vector<28x128xf32>
    %77 = vector.extract_strided_slice %73 {offsets = [1, 0], sizes = [1, 128], strides = [1, 1]} : vector<2x128xf32> to vector<1x128xf32>
    %78 = vector.broadcast %77 : vector<1x128xf32> to vector<28x128xf32>
    %79 = arith.addf %76, %78 : vector<28x128xf32>
    %cst_44 = arith.constant 0.000000e+00 : f32
    %80 = vector.broadcast %cst_44 : f32 to vector<28x128xf32>
    %81 = arith.maximumf %79, %80 : vector<28x128xf32>
    %82 = arith.truncf %81 : vector<28x128xf32> to vector<28x128xbf16>
    %c0_45 = arith.constant 0 : index
    %c0_46 = arith.constant 0 : index
    %83 = vector.load %arg13[%c0_45, %c0_46] : memref<128x384xbf16, #tpu.memory_space<vmem>>, vector<128x384xbf16>
    %cst_47 = arith.constant dense<0.000000e+00> : vector<28x384xf32>
    %84 = tpu.matmul %82, %83, %cst_47 {dimension_numbers = #tpu.dot_dimension_numbers<[1], [0], [0], [1], [0, 0, 1, 1], [], []>} : vector<28x128xbf16>, vector<128x384xbf16>, vector<28x384xf32> -> vector<28x384xf32>
    %c0_48 = arith.constant 0 : index
    %c0_49 = arith.constant 0 : index
    %85 = vector.load %arg14[%c0_48, %c0_49] : memref<1x384xf32, #tpu.memory_space<vmem>>, vector<1x384xf32>
    %86 = vector.broadcast %85 : vector<1x384xf32> to vector<28x384xf32>
    %87 = arith.addf %84, %86 : vector<28x384xf32>
    %cst_50 = arith.constant 0.000000e+00 : f32
    %88 = vector.broadcast %cst_50 : f32 to vector<28x384xf32>
    %89 = arith.maximumf %87, %88 : vector<28x384xf32>
    %c0_51 = arith.constant 0 : index
    %c0_52 = arith.constant 0 : index
    %90 = vector.load %arg15[%c0_51, %c0_52] : memref<28x384xf32, #tpu.memory_space<vmem>>, vector<28x384xf32>
    tpu.vector_store %arg15[%c0_51, %c0_52], %89 {strides = array<i32>} : memref<28x384xf32, #tpu.memory_space<vmem>>, vector<28x384xf32>,
    return
  }
}

</mosaic_0001>

<bundles_post_ra>
// kernel: tile.18
= control target key start
LH: loop header
LB: loop body
LE: loop exit
PB: predicated region body
PF: predicated region fallthrough
CT: control target
= control target key end

     0   :  { %s52_s0 = inlined_call_operand.vmem [shape: f32[8], index: 0, kind: input, shape index: {}]   ;;  %s53_s1 = inlined_call_operand.vmem [shape: f32[48,8], index: 1, kind: output, shape index: {}]  }
   0x1   :  { %v4_v0 = vld [vmem:[%s52_s0] ss:$0 sm:$0xff] }
   0x2   :  { %5 = vst [vmem:[%s53_s1] sm:$0xff] %v4_v0 }
   0x3   :  { %16 = vst [vmem:[%s53_s1 + $0x8] sm:$0xff] %v4_v0 }
   0x4   :  { %17 = vst [vmem:[%s53_s1 + $0x10] sm:$0xff] %v4_v0 }
   0x5   :  { %18 = vst [vmem:[%s53_s1 + $0x18] sm:$0xff] %v4_v0 }
   0x6   :  { %19 = vst [vmem:[%s53_s1 + $0x20] sm:$0xff] %v4_v0 }
   0x7   :  { %20 = vst [vmem:[%s53_s1 + $0x28] sm:$0xff] %v4_v0 }

// kernel: tile.19
= control target key start
LH: loop header
LB: loop body
LE: loop exit
PB: predicated region body
PF: predicated region fallthrough
CT: control target
= control target key end

     0   :  { %vm6_vm0 = vcmask 1042434   ;;  %s11_s6 = smov 3  ;;  %s33_s11 = smov 3  ;;  %vm8_vm1 = vcmask 64512   ;;  %vm19_vm2 = vcmask 1048512   ;;  %vm30_vm3 = vcmask 982912   ;;  %s387_s0 = inlined_call_operand.vmem [shape: f32[48,8], index: 0, kind: input, shape index: {}]   ;;  %s388_s1 = inlined_call_operand.vmem [shape: f32[1,384], index: 1, kind: output, shape index: {}]  }
   0x1   :  { %v195_v0 = vld [vmem:[%s387_s0 + $0x2d] sm:$0x4]   ;;  %v199_v2 = vld [vmem:[%s387_s0 + $0x2b] sm:$0x4]   ;;  %s22_s16 = smov 3  ;;  %s241_s17 = smov 120  }
   0x2   :  { %v194_v1 = vld [vmem:[%s387_s0 + $0xf] ss:$16 sm:%s11_s6]   ;;  %v198_v4 = vld [vmem:[%s387_s0 + $0xd] ss:$16 sm:%s33_s11]   ;;  %s44_s18 = smov 3  ;;  %s242_s19 = smov 104  }
   0x3   :  { %v16_v3 = vsel %vm6_vm0, %v195_v0, %v194_v1  ;;  %v38_v5 = vsel %vm6_vm0, %v199_v2, %v198_v4  ;;  %v196_v6 = vld [vmem:[%s387_s0 + $0xe] ss:$16 sm:%s22_s16]   ;;  %v200_v8 = vld [vmem:[%s387_s0 + $0xc] ss:$16 sm:%s44_s18]   ;;  %s55_s28 = smov 3  ;;  %s77_s2 = smov 3 }
   0x4   :  { %17 = vrot.lane.b32.xlu0 %v16_v3, %s241_s17  ;;  %39 = vrot.lane.b32.xlu1 %v38_v5, %s242_s19  ;;  %v197_v7 = vld [vmem:[%s387_s0 + $0x2c] sm:$0x4]   ;;  %v201_v9 = vld [vmem:[%s387_s0 + $0x2a] sm:$0x4]   ;;  %s243_s5 = smov 112   ;;  %s88_s6 = smov 3 }
   0x5   :  { %v27_v10 = vsel %vm6_vm0, %v197_v7, %v196_v6  ;;  %v203_v11 = vld [vmem:[%s387_s0 + $0x29] sm:$0x4]   ;;  %v49_v12 = vsel %vm6_vm0, %v201_v9, %v200_v8  ;;  %s244_s7 = smov 88   ;;  %s66_s8 = smov 3  ;;  %v206_v15 = vld [vmem:[%s387_s0 + $0x9] ss:$16 sm:%s77_s2]  }
   0x6   :  { %v202_v13 = vld [vmem:[%s387_s0 + $0xb] ss:$16 sm:%s55_s28]   ;;  %s245_s9 = smov 96   ;;  %v207_v16 = vld [vmem:[%s387_s0 + $0x27] sm:$0x4]   ;;  %s110_s22 = smov 3 }
   0x7   :  { %v60_v14 = vsel %vm6_vm0, %v203_v11, %v202_v13  ;;  %v204_v17 = vld [vmem:[%s387_s0 + $0xa] ss:$16 sm:%s66_s8]   ;;  %v208_v19 = vld [vmem:[%s387_s0 + $0x8] ss:$16 sm:%s88_s6]   ;;  %v82_v21 = vsel %vm6_vm0, %v207_v16, %v206_v15  ;;  %s99_s23 = smov 3  ;;  %s246_s24 = smov 72  }
   0x8   :  { %61 = vrot.lane.b32.xlu2 %v60_v14, %s244_s7  ;;  %v205_v18 = vld [vmem:[%s387_s0 + $0x28] sm:$0x4]   ;;  %v209_v20 = vld [vmem:[%s387_s0 + $0x26] sm:$0x4]   ;;  %s121_s25 = smov 3  ;;  %s247_s26 = smov 80  }
   0x9   :  { %v71_v22 = vsel %vm6_vm0, %v205_v18, %v204_v17  ;;  %v93_v23 = vsel %vm6_vm0, %v209_v20, %v208_v19  ;;  %s248_s27 = smov 64   ;;  %v212_v24 = vld [vmem:[%s387_s0 + $0x6] ss:$16 sm:%s110_s22]   ;;  %v210_v26 = vld [vmem:[%s387_s0 + $0x7] ss:$16 sm:%s99_s23]   ;;  %s143_s11 = smov 3 }
   0xa   :  { %v213_v25 = vld [vmem:[%s387_s0 + $0x24] sm:$0x4]   ;;  %v211_v27 = vld [vmem:[%s387_s0 + $0x25] sm:$0x4]   ;;  %v214_v28 = vld [vmem:[%s387_s0 + $0x5] ss:$16 sm:%s121_s25]  }
   0xb   :  { %v215_v29 = vld [vmem:[%s387_s0 + $0x23] sm:$0x4]   ;;  %v115_v30 = vsel %vm6_vm0, %v213_v25, %v212_v24  ;;  %v104_v31 = vsel %vm6_vm0, %v211_v27, %v210_v26  ;;  %s132_s12 = smov 3  ;;  %s249_s13 = smov 48   ;;  %v218_v33 = vld [vmem:[%s387_s0 + $0x3] ss:$16 sm:%s143_s11]  }
   0xc   :  { %28 = vrot.lane.b32.xlu0 %v27_v10, %s243_s5  ;;  %50 = vrot.lane.b32.xlu1 %v49_v12, %s245_s9  ;;  %v126_v32 = vsel %vm6_vm0, %v215_v29, %v214_v28  ;;  %s154_s14 = smov 3  ;;  %s250_s15 = smov 56   ;;  %v219_v34 = vld [vmem:[%s387_s0 + $0x21] sm:$0x4]   ;;  %v217_v36 = vld [vmem:[%s387_s0 + $0x22] sm:$0x4]  }
   0xd   :  { %s251_s16 = smov 40   ;;  %v216_v35 = vld [vmem:[%s387_s0 + $0x4] ss:$16 sm:%s132_s12]   ;;  %v220_v37 = vld [vmem:[%s387_s0 + $0x2] ss:$16 sm:%s154_s14]   ;;  %v148_v39 = vsel %vm6_vm0, %v219_v34, %v218_v33  ;;  %s165_s29 = smov 3 }
   0xe   :  { %v221_v38 = vld [vmem:[%s387_s0 + $0x20] sm:$0x4]   ;;  %v137_v40 = vsel %vm6_vm0, %v217_v36, %v216_v35  ;;  %s252_s30 = smov 24   ;;  %s253_s2 = smov 32   ;;  %v222_v42 = vld [vmem:[%s387_s0 + $0x1] ss:$16 sm:%s165_s29]  }
   0xf   :  { %v159_v41 = vsel %vm6_vm0, %v221_v38, %v220_v37  ;;  %s254_s3 = smov 16   ;;  %v223_v43 = vld [vmem:[%s387_s0 + $0x1f] sm:$0x4]   ;;  %s255_s8 = smov 8   ;;  %v193_v46 = vld [vmem:[%s387_s0 + $0x1e] sm:$0x4]  }
  0x10   :  { %72 = vrot.lane.b32.xlu2 %v71_v22, %s247_s26  ;;  %v170_v44 = vsel %vm6_vm0, %v223_v43, %v222_v42  ;;  %s2_s9 = smov 3  ;;  %vm41_vm4 = vcmask 917312   ;;  %vm52_vm5 = vcmask 851712   ;;  %vm63_vm6 = vcmask 786112  }
  0x11   :  { %v3_v45 = vld [vmem:[%s387_s0] ss:$16 sm:%s2_s9]   ;;  %vm74_vm7 = vcmask 720512   ;;  %vm85_vm8 = vcmask 654912   ;;  %vm96_vm9 = vcmask 589312   ;;  %vm107_vm10 = vcmask 523712  }
  0x12   :  { %v7_v47 = vsel %vm6_vm0, %v193_v46, %v3_v45  ;;  %vm118_vm11 = vcmask 458112   ;;  %vm129_vm12 = vcmask 392512   ;;  %vm140_vm13 = vcmask 326912  }
  0x13   :  { %9 = vst.msk [vmem:[#allocation0] ss:$8 sm:$0x7] %vm8_vm1, %v7_v47   ;;  %vm151_vm14 = vcmask 261312   ;;  %vm162_vm15 = vcmask 195712   ;;  %vm173_vm0 = vcmask 130112  }
  0x14   :  { %83 = vrot.lane.b32.xlu0 %v82_v21, %s246_s24  ;;  %94 = vrot.lane.b32.xlu1 %v93_v23, %s248_s27 }
  0x18   :  { %105 = vrot.lane.b32.xlu2 %v104_v31, %s250_s15 }
  0x1c   :  { %116 = vrot.lane.b32.xlu0 %v115_v30, %s249_s13  ;;  %127 = vrot.lane.b32.xlu1 %v126_v32, %s251_s16 }
  0x20   :  { %138 = vrot.lane.b32.xlu2 %v137_v40, %s253_s2 }
  0x24   :  { %149 = vrot.lane.b32.xlu0 %v148_v39, %s252_s30  ;;  %160 = vrot.lane.b32.xlu1 %v159_v41, %s254_s3 }
  0x28   :  { %171 = vrot.lane.b32.xlu2 %v170_v44, %s255_s8 }
  0x62   :  { %v62_v48 = vpop.permute.xlu2 %61  }
  0x6a   :  { %v73_v49 = vpop.permute.xlu2 %72  }
  0x72   :  { %v106_v51 = vpop.permute.xlu2 %105  }
  0x76   :  { %v18_v50 = vpop.permute.xlu0 %17   ;;  %v40_v52 = vpop.permute.xlu1 %39  }
  0x77   :  { %20 = vst.msk [vmem:[#allocation0] ss:$8 sm:$0x7] %vm19_vm2, %v18_v50  }
  0x7a   :  { %v139_v54 = vpop.permute.xlu2 %138  }
  0x7e   :  { %v29_v53 = vpop.permute.xlu0 %28   ;;  %v51_v55 = vpop.permute.xlu1 %50  }
  0x7f   :  { %31 = vst.msk [vmem:[#allocation0] ss:$8 sm:$0x7] %vm30_vm3, %v29_v53  }
  0x80   :  { %42 = vst.msk [vmem:[#allocation0] ss:$8 sm:$0x7] %vm41_vm4, %v40_v52  }
  0x81   :  { %53 = vst.msk [vmem:[#allocation0] ss:$8 sm:$0x7] %vm52_vm5, %v51_v55  }
  0x82   :  { %64 = vst.msk [vmem:[#allocation0] ss:$8 sm:$0x7] %vm63_vm6, %v62_v48   ;;  %v172_v57 = vpop.permute.xlu2 %171  }
  0x83   :  { %75 = vst.msk [vmem:[#allocation0] ss:$8 sm:$0x7] %vm74_vm7, %v73_v49  }
  0x86   :  { %v84_v56 = vpop.permute.xlu0 %83   ;;  %v95_v58 = vpop.permute.xlu1 %94  }
  0x87   :  { %86 = vst.msk [vmem:[#allocation0] ss:$8 sm:$0x7] %vm85_vm8, %v84_v56  }
  0x88   :  { %97 = vst.msk [vmem:[#allocation0] ss:$8 sm:$0x7] %vm96_vm9, %v95_v58  }
  0x89   :  { %108 = vst.msk [vmem:[#allocation0] ss:$8 sm:$0x7] %vm107_vm10, %v106_v51  }
  0x8e   :  { %v117_v59 = vpop.permute.xlu0 %116   ;;  %v128_v60 = vpop.permute.xlu1 %127  }
  0x8f   :  { %119 = vst.msk [vmem:[#allocation0] ss:$8 sm:$0x7] %vm118_vm11, %v117_v59  }
  0x90   :  { %130 = vst.msk [vmem:[#allocation0] ss:$8 sm:$0x7] %vm129_vm12, %v128_v60  }
  0x91   :  { %141 = vst.msk [vmem:[#allocation0] ss:$8 sm:$0x7] %vm140_vm13, %v139_v54  }
  0x96   :  { %v150_v61 = vpop.permute.xlu0 %149   ;;  %v161_v62 = vpop.permute.xlu1 %160  }
  0x97   :  { %152 = vst.msk [vmem:[#allocation0] ss:$8 sm:$0x7] %vm151_vm14, %v150_v61  }
  0x98   :  { %163 = vst.msk [vmem:[#allocation0] ss:$8 sm:$0x7] %vm162_vm15, %v161_v62  }
  0x99   :  { %174 = vst.msk [vmem:[#allocation0] ss:$8 sm:$0x7] %vm173_vm0, %v172_v57  }
  0xa0   :  { %v177_v63 = vld [vmem:[#allocation0] sm:$0x1]  ;;  %v182_v0 = vld [vmem:[#allocation0 + $0x8] sm:$0x1]  ;;  %v188_v1 = vld [vmem:[#allocation0 + $0x10] sm:$0x1] }
  0xa1   :  { %180 = vst [vmem:[%s388_s1] sm:$0x1] %v177_v63 }
  0xa2   :  { %224 = vst [vmem:[%s388_s1 + $0x1] sm:$0x1] %v182_v0 }
  0xa3   :  { %225 = vst [vmem:[%s388_s1 + $0x2] sm:$0x1] %v188_v1 }

// kernel: unet_encoder_forward.1
= control target key start
LH: loop header
LB: loop body
LE: loop exit
PB: predicated region body
PF: predicated region fallthrough
CT: control target
= control target key end

     0   :  { %vm169_vm0 = vcmask 523264   ;;  %vm235_vm1 = vcmask 1043456   ;;  %vm258_vm2 = vcmask 1040384   ;;  %vm309_vm6 = vcmask 64512   ;;  %s2077_s1 = inlined_call_operand.vmem [shape: bf16[192,128], index: 1, kind: input, shape index: {}]   ;;  %s2078_s0 = inlined_call_operand.vmem [shape: bf16[28,192], index: 0, kind: input, shape index: {}]   ;;  %s2079_s4 = inlined_call_operand.vmem [shape: f32[128,8], index: 4, kind: input, shape index: {}]   ;;  %s2080_s5 = inlined_call_operand.vmem [shape: f32[8,128], index: 5, kind: input, shape index: {}]   ;;  %s2081_s2 = inlined_call_operand.vmem [shape: f32[1,8], index: 2, kind: input, shape index: {}]   ;;  %s2082_s3 = inlined_call_operand.vmem [shape: f32[1,8], index: 3, kind: input, shape index: {}]   ;;  %s2083_s6 = inlined_call_operand.vmem [shape: f32[2,28,28], index: 6, kind: input, shape index: {}]   ;;  %s2084_s8 = inlined_call_operand.vmem [shape: bf16[384,128], index: 8, kind: input, shape index: {}]   ;;  %s2085_s7 = inlined_call_operand.vmem [shape: f32[28,1], index: 7, kind: input, shape index: {}]   ;;  %s2086_s11 = inlined_call_operand.vmem [shape: f32[128,8], index: 11, kind: input, shape index: {}]   ;;  %s2087_s12 = inlined_call_operand.vmem [shape: f32[8,128], index: 12, kind: input, shape index: {}]   ;;  %s2088_s13 = inlined_call_operand.vmem [shape: bf16[128,384], index: 13, kind: input, shape index: {}]   ;;  %s2089_s9 = inlined_call_operand.vmem [shape: f32[1,8], index: 9, kind: input, shape index: {}]   ;;  %s2090_s10 = inlined_call_operand.vmem [shape: f32[1,8], index: 10, kind: input, shape index: {}]   ;;  %s2091_s14 = inlined_call_operand.vmem [shape: f32[1,384], index: 14, kind: input, shape index: {}]   ;;  %s2092_s15 = inlined_call_operand.vmem [shape: f32[28,384], index: 15, kind: output, shape index: {}]  }
   0x1   :  { %v1395_v0 = vld [vmem:[%s2077_s1 + $0x38] sm:$0xff]  ;;  %v1394_v2 = vld [vmem:[%s2077_s1 + $0x30] sm:$0xff]  ;;  %v1393_v4 = vld [vmem:[%s2077_s1 + $0x28] sm:$0xff]  ;;  %vm351_vm7 = vcmask 228352  }
   0x2   :  { %v1399_v1 = vld [vmem:[%s2077_s1 + $0x58] sm:$0xff]  ;;  %176 = vmatpush.bf16.msra.mxu0 %v1395_v0  ;;  %v1398_v3 = vld [vmem:[%s2077_s1 + $0x50] sm:$0xff]  ;;  %v1397_v5 = vld [vmem:[%s2077_s1 + $0x48] sm:$0xff] }
   0x3   :  { %199 = vmatpush.bf16.msra.mxu1 %v1399_v1  ;;  %v1392_v6 = vld [vmem:[%s2077_s1 + $0x20] sm:$0xff]  ;;  %v1114_v9 = vld [vmem:[%s2078_s0 + $0x8] sm:$0xf0]  ;;  %v1391_v10 = vld [vmem:[%s2077_s1 + $0x18] sm:$0xff] }
   0x4   :  { %v1396_v7 = vld [vmem:[%s2077_s1 + $0x40] sm:$0xff]  ;;  %v1390_v12 = vld [vmem:[%s2077_s1 + $0x10] sm:$0xff]  ;;  %v1389_v13 = vld [vmem:[%s2077_s1 + $0x8] sm:$0xff] }
   0x5   :  { %v1384_v8 = vld [vmem:[%s2078_s0 + $0x4] sm:$0xf]  ;;  %v1112_v15 = vld [vmem:[%s2078_s0] sm:$0xf]  ;;  %v1385_v16 = vld [vmem:[%s2078_s0 + $0x4] sm:$0xf0] }
   0x6   :  { %177 = vmatpush.bf16.msra.mxu0 %v1394_v2  ;;  %v1117_v11 = vor.u32 %v1384_v8, %v1114_v9  ;;  %v1388_v14 = vld [vmem:[%s2077_s1] sm:$0xff]  ;;  %v1386_v17 = vld [vmem:[%s2078_s0 + $0x14] sm:$0xf]  ;;  %v1122_v18 = vld [vmem:[%s2078_s0 + $0x18] sm:$0x30]  ;;  %v1113_v19 = vor.u32 %v1385_v16, %v1112_v15 }
   0x7   :  { %200 = vmatpush.bf16.msra.mxu1 %v1398_v3  ;;  %v1125_v20 = vor.u32 %v1386_v17, %v1122_v18  ;;  %v1120_v21 = vld [vmem:[%s2078_s0 + $0x10] sm:$0xf]  ;;  %v1387_v22 = vld [vmem:[%s2078_s0 + $0x14] sm:$0x30]  ;;  %v227_v26 = vld [vmem:[%s2079_s4 + $0x68] sm:$0xff] }
   0x8   :  { %v1121_v23 = vor.u32 %v1387_v22, %v1120_v21  ;;  %v229_v24 = vld [vmem:[%s2079_s4 + $0x78] sm:$0xff]  ;;  %v228_v25 = vld [vmem:[%s2079_s4 + $0x70] sm:$0xff]  ;;  %v226_v27 = vld [vmem:[%s2079_s4 + $0x60] sm:$0xff] }
   0x9   :  { %260 = vmatpush.msra.mxu2 %v229_v24  ;;  %v225_v28 = vld [vmem:[%s2079_s4 + $0x58] sm:$0xff]  ;;  %v224_v29 = vld [vmem:[%s2079_s4 + $0x50] sm:$0xff]  ;;  %v223_v30 = vld [vmem:[%s2079_s4 + $0x48] sm:$0xff] }
   0xa   :  { %178 = vmatpush.bf16.msra.mxu0 %v1393_v4  ;;  %v222_v32 = vld [vmem:[%s2079_s4 + $0x40] sm:$0xff]  ;;  %v221_v33 = vld [vmem:[%s2079_s4 + $0x38] sm:$0xff]  ;;  %v220_v34 = vld [vmem:[%s2079_s4 + $0x30] sm:$0xff] }
   0xb   :  { %201 = vmatpush.bf16.msra.mxu1 %v1397_v5  ;;  %261 = vmatpush.msra.mxu2 %v228_v25  ;;  %v219_v36 = vld [vmem:[%s2079_s4 + $0x28] sm:$0xff]  ;;  %v218_v37 = vld [vmem:[%s2079_s4 + $0x20] sm:$0xff]  ;;  %v217_v38 = vld [vmem:[%s2079_s4 + $0x18] sm:$0xff] }
   0xc   :  { %v216_v40 = vld [vmem:[%s2079_s4 + $0x10] sm:$0xff]  ;;  %v215_v41 = vld [vmem:[%s2079_s4 + $0x8] sm:$0xff]  ;;  %v214_v43 = vld [vmem:[%s2079_s4] sm:$0xff] }
   0xd   :  { %262 = vmatpush.msra.mxu2 %v227_v26  ;;  %v230_v18 = vld [vmem:[%s2080_s5] sm:$0xff] }
   0xe   :  { %179 = vmatpush.bf16.msra.mxu0 %v1392_v6  ;;  %328 = vmatpush.msra.mxu3 %v230_v18  ;;  %v1408_v18 = vld [vmem:[%s2084_s8 + $0x40] sm:$0xff] }
   0xf   :  { %202 = vmatpush.bf16.msra.mxu1 %v1396_v7  ;;  %263 = vmatpush.msra.mxu2 %v226_v27  ;;  %v231_v27 = vld [vmem:[%s2081_s2] sm:$0x1] }
  0x11   :  { %264 = vmatpush.msra.mxu2 %v225_v28 }
  0x12   :  { %180 = vmatpush.bf16.msra.mxu0 %v1391_v10  ;;  %1174 = vmatmul.msk.bf16.vlgmr.msra.gmra.mxu1 %vm169_vm0, %v1117_v11 }
  0x13   :  { %265 = vmatpush.msra.mxu2 %v224_v29 }
  0x15   :  { %266 = vmatpush.msra.mxu2 %v223_v30  ;;  %v232_v30 = vld [vmem:[%s2082_s3] sm:$0x1] }
  0x16   :  { %181 = vmatpush.bf16.msra.mxu0 %v1390_v12 }
  0x17   :  { %267 = vmatpush.msra.mxu2 %v222_v32 }
  0x19   :  { %268 = vmatpush.msra.mxu2 %v221_v33 }
  0x1a   :  { %182 = vmatpush.bf16.msra.mxu0 %v1389_v13 }
  0x1b   :  { %269 = vmatpush.msra.mxu2 %v220_v34 }
  0x1d   :  { %270 = vmatpush.msra.mxu2 %v219_v36 }
  0x1e   :  { %183 = vmatpush.bf16.msra.mxu0 %v1388_v14 }
  0x1f   :  { %271 = vmatpush.msra.mxu2 %v218_v37 }
  0x21   :  { %184 = vmatmul.bf16.vlgmr.msra.gmra.mxu0 %v1113_v19  ;;  %272 = vmatpush.msra.mxu2 %v217_v38 }
  0x22   :  { %1175 = vmatmul.msk.bf16.gmra.mxu1 %vm169_vm0, %v1125_v20 }
  0x23   :  { %273 = vmatpush.msra.mxu2 %v216_v40 }
  0x25   :  { %274 = vmatpush.msra.mxu2 %v215_v41 }
  0x27   :  { %275 = vmatpush.msra.mxu2 %v214_v43 }
  0x31   :  { %189 = vmatmul.bf16.gmra.mxu0 %v1121_v23 }
  0x8f   :  { %v204_v31 = vpop.f32.mrf.mxu1 }
  0x97   :  { %v206_v39 = vpop.f32.mrf.mxu1 }
  0x9e   :  { %v185_v35 = vpop.f32.mrf.mxu0 }
  0x9f   :  { %v209_v44 = vpop.f32.mrf.mxu1  ;;  %v1648_v47 = vadd.f32 %v204_v31, %v185_v35 }
  0xa1   :  { %v244_v50 = vmul.f32 %v1648_v47, %v1648_v47 }
  0xa6   :  { %v187_v42 = vpop.f32.mrf.mxu0 }
  0xa7   :  { %v1646_v46 = vadd.f32 %v206_v39, %v187_v42  ;;  %v211_v53 = vpop.f32.mrf.mxu1 }
  0xa9   :  { %v245_v49 = vmul.f32 %v1646_v46, %v1646_v46  ;;  %v233_v51 = vadd.f32 %v1646_v46, %v1648_v47 }
  0xab   :  { %v248_v56 = vadd.f32 %v245_v49, %v244_v50 }
  0xae   :  { %v190_v45 = vpop.f32.mrf.mxu0 }
  0xaf   :  { %v1650_v48 = vadd.f32 %v209_v44, %v190_v45 }
  0xb1   :  { %v246_v52 = vmul.f32 %v1650_v48, %v1650_v48  ;;  %v234_v57 = vadd.f32 %v233_v51, %v1650_v48  ;;  %v1182_v51 = vld [vmem:[%s2083_s6 + $0x20] sm:$0xff] }
  0xb3   :  { %v249_v60 = vadd.f32 %v248_v56, %v246_v52  ;;  %v1407_v52 = vld [vmem:[%s2084_s8 + $0x38] sm:$0xff]  ;;  %v1405_v56 = vld [vmem:[%s2084_s8 + $0x28] sm:$0xff] }
  0xb6   :  { %v192_v54 = vpop.f32.mrf.mxu0 }
  0xb7   :  { %v212_v55 = vadd.f32 %v211_v53, %v192_v54  ;;  %v1406_v53 = vld [vmem:[%s2084_s8 + $0x30] sm:$0xff]  ;;  %v348_v54 = vld [vmem:[%s2083_s6 + $0x8] sm:$0xff] }
  0xb9   :  { %v236_v58 = vsel %vm235_vm1, %v212_v55, 0.0  ;;  %v247_v59 = vmul.f32 %v212_v55, %v212_v55 }
  0xba   :  { %v237_v61 = vadd.f32 %v236_v58, %v234_v57  ;;  %v1404_v57 = vld [vmem:[%s2084_s8 + $0x20] sm:$0xff]  ;;  %v349_v58 = vld [vmem:[%s2083_s6 + $0x10] sm:$0xff] }
  0xbb   :  { %v250_v62 = vsel %vm235_vm1, %v247_v59, 0.0  ;;  %v1184_v59 = vld [vmem:[%s2083_s6 + $0x30] sm:$0xff] }
  0xbc   :  { %v238_v63 = vrot.slane %v237_v61, 4  ;;  %v251_v0 = vadd.f32 %v250_v62, %v249_v60  ;;  %v1403_v60 = vld [vmem:[%s2084_s8 + $0x18] sm:$0xff]  ;;  %v1402_v62 = vld [vmem:[%s2084_s8 + $0x10] sm:$0xff] }
  0xbe   :  { %v239_v1 = vadd.f32 %v238_v63, %v237_v61  ;;  %v252_v2 = vrot.slane %v251_v0, 4  ;;  %v1415_v61 = vld [vmem:[%s2084_s8 + $0x78] sm:$0xff]  ;;  %v1414_v63 = vld [vmem:[%s2084_s8 + $0x70] sm:$0xff] }
  0xbf   :  { %659 = vmatpush.bf16.msrb.mxu1 %v1415_v61 }
  0xc0   :  { %v240_v3 = vrot.slane %v239_v1, 2  ;;  %v253_v4 = vadd.f32 %v252_v2, %v251_v0  ;;  %v350_v0 = vld [vmem:[%s2083_s6 + $0x18] sm:$0xf]  ;;  %v1401_v2 = vld [vmem:[%s2084_s8 + $0x8] sm:$0xff] }
  0xc2   :  { %v241_v5 = vadd.f32 %v240_v3, %v239_v1  ;;  %v254_v6 = vrot.slane %v253_v4, 2  ;;  %v1185_v1 = vld [vmem:[%s2083_s6 + $0x38] sm:$0xf]  ;;  %v1413_v3 = vld [vmem:[%s2084_s8 + $0x68] sm:$0xff] }
  0xc3   :  { %660 = vmatpush.bf16.msrb.mxu1 %v1414_v63 }
  0xc4   :  { %v242_v7 = vrot.slane %v241_v5, 1  ;;  %v255_v8 = vadd.f32 %v254_v6, %v253_v4  ;;  %v1400_v4 = vld [vmem:[%s2084_s8] sm:$0xff] }
  0xc5   :  { %v1412_v6 = vld [vmem:[%s2084_s8 + $0x60] sm:$0xff] }
  0xc6   :  { %v256_v9 = vrot.slane %v255_v8, 1  ;;  %v243_v10 = vadd.f32 %v242_v7, %v241_v5  ;;  %v1423_v5 = vld [vmem:[%s2084_s8 + $0xb8] sm:$0xff] }
  0xc7   :  { %661 = vmatpush.bf16.msrb.mxu1 %v1413_v3 }
  0xc8   :  { %v257_v11 = vadd.f32 %v256_v9, %v255_v8  ;;  %v1422_v8 = vld [vmem:[%s2084_s8 + $0xb0] sm:$0xff]  ;;  %v1411_v9 = vld [vmem:[%s2084_s8 + $0x58] sm:$0xff] }
  0xca   :  { %v259_v12 = vsel %vm258_vm2, %v243_v10, %v257_v11  ;;  %v1421_v10 = vld [vmem:[%s2084_s8 + $0xa8] sm:$0xff]  ;;  %v1420_v11 = vld [vmem:[%s2084_s8 + $0xa0] sm:$0xff] }
  0xcb   :  { %276 = vmatmul.f32.vlgmr.msra.gmra.mxu2 %v259_v12  ;;  %662 = vmatpush.bf16.msrb.mxu1 %v1412_v6  ;;  %v1419_v12 = vld [vmem:[%s2084_s8 + $0x98] sm:$0xff] }
  0xcf   :  { %663 = vmatpush.bf16.msrb.mxu1 %v1411_v9 }
 0x14e   :  { %v277_v13 = vpop.f32.mrf.mxu2 }
 0x14f   :  { %v280_v14 = vmul.f32 0.0025510204, %v277_v13 }
 0x151   :  { %v281_v15 = vmul.f32 %v280_v14, %v280_v14 }
 0x153   :  { %v283_v16 = vrot.slane %v281_v15, 7  ;;  %v1418_v15 = vld [vmem:[%s2084_s8 + $0x90] sm:$0xff] }
 0x155   :  { %v285_v17 = vsub.f32 %v280_v14, %v283_v16  ;;  %v1409_v16 = vld [vmem:[%s2084_s8 + $0x48] sm:$0xff] }
 0x157   :  { %v286_v19 = vadd.f32 1e-05, %v285_v17  ;;  %v1417_v17 = vld [vmem:[%s2084_s8 + $0x88] sm:$0xff] }
 0x159   :  { %1451 = vrsqrt.f32 %v286_v19  ;;  %vm293_vm4 = vweird.f32 %v286_v19 }
 0x15f   :  { %v1452_v20 = vpop.eup %1451 }
 0x160   :  { %v288_v21 = vmul.f32 %v1452_v20, %v286_v19  ;;  %vm294_vm3 = vweird.f32 %v1452_v20  ;;  %v1416_v19 = vld [vmem:[%s2084_s8 + $0x80] sm:$0xff] }
 0x161   :  { %vm295_vm5 = vmor %vm293_vm4, %vm294_vm3 }
 0x162   :  { %v289_v22 = vmul.f32 %v1452_v20, %v288_v21  ;;  %v1455_v21 = vmov 0  }
 0x163   :  { %1449 = vset.pattern.permute.xlu0 %v1455_v21  ;;  %1450 = vset.pattern.permute.xlu1 %v1455_v21 }
 0x164   :  { %v290_v23 = vmul.f32 0.5, %v289_v22 }
 0x166   :  { %v291_v24 = vsub.f32 1.5, %v290_v23 }
 0x168   :  { %v292_v25 = vmul.f32 %v1452_v20, %v291_v24  ;;  %v699_v24 = vld [vmem:[%s2085_s7 + $0x10] sm:$0xff] }
 0x169   :  { %732 = vperm.xlu1 %1450, %v699_v24  }
 0x16a   :  { %v296_v26 = vsel %vm295_vm5, %v1452_v20, %v292_v25  ;;  %v697_v20 = vld [vmem:[%s2085_s7] sm:$0xff]  ;;  %v698_v25 = vld [vmem:[%s2085_s7 + $0x8] sm:$0xff] }
 0x16b   :  { %298 = vst [vmem:[#allocation1] sm:$0xff] %v296_v26  ;;  %722 = vperm.xlu0 %1449, %v697_v20  }
 0x172   :  { %v300_v28 = vld [vmem:[#allocation1 + $0x1] ss:$9 sm:$0xff] }
 0x173   :  { %v302_v29 = vmul.f32 %v300_v28, %v231_v27  ;;  %727 = vperm.xlu0 %1449, %v698_v25   ;;  %v700_v28 = vld [vmem:[%s2085_s7 + $0x18] sm:$0xf] }
 0x174   :  { %737 = vperm.xlu1 %1450, %v700_v28  }
 0x175   :  { %v303_v31 = vmul.f32 %v302_v29, %v280_v14  ;;  %v1410_v14 = vld [vmem:[%s2084_s8 + $0x50] sm:$0xff] }
 0x176   :  { %664 = vmatpush.bf16.msrb.mxu1 %v1410_v14 }
 0x177   :  { %v304_v32 = vsub.f32 %v232_v30, %v303_v31 }
 0x179   :  { %v306_v33 = vperm.slane %v304_v32, 0 }
 0x17a   :  { %665 = vmatpush.bf16.msrb.mxu1 %v1409_v16 }
 0x17b   :  { %v308_v34 = vsel %vm258_vm2, %v302_v29, %v306_v33 }
 0x17c   :  { %1176 = vmatmul.msk.f32.vlgmr.msra.gmra.mxu3 %vm309_vm6, %v308_v34 }
 0x17e   :  { %666 = vmatpush.bf16.msrb.mxu1 %v1408_v18 }
 0x1db   :  { %v733_v3 = vpop.permute.xlu1 %732 }
 0x1ff   :  { %v330_v35 = vpop.f32.mrf.mxu3 }
 0x200   :  { %v333_v36 = vperm.slane %v330_v35, 0  ;;  %v338_v37 = vperm.slane %v330_v35, 1 }
 0x202   :  { %v337_v38 = vmul.f32 %v333_v36, %v212_v55  ;;  %v336_v39 = vmul.f32 %v333_v36, %v1650_v48  ;;  %v335_v40 = vmul.f32 %v333_v36, %v1646_v46  ;;  %v334_v43 = vmul.f32 %v333_v36, %v1648_v47  ;;  %v347_v48 = vld [vmem:[%s2083_s6] sm:$0xff]  ;;  %v1183_v55 = vld [vmem:[%s2083_s6 + $0x28] sm:$0xff] }
 0x204   :  { %v342_v41 = vadd.f32 %v338_v37, %v337_v38  ;;  %v341_v42 = vadd.f32 %v338_v37, %v336_v39  ;;  %v340_v45 = vadd.f32 %v338_v37, %v335_v40  ;;  %v339_v50 = vadd.f32 %v338_v37, %v334_v43  ;;  %v716_v40 = vld [vmem:[%s2086_s11 + $0x78] sm:$0xff]  ;;  %v713_v43 = vld [vmem:[%s2086_s11 + $0x60] sm:$0xff] }
 0x206   :  { %v1678_v44 = vmax.f32 %v342_v41, 0.0  ;;  %v1684_v49 = vmax.f32 %v341_v42, 0.0  ;;  %v344_v46 = vmax.f32 %v340_v45, 0.0  ;;  %v343_v47 = vmax.f32 %v339_v50, 0.0  ;;  %v715_v41 = vld [vmem:[%s2086_s11 + $0x70] sm:$0xff]  ;;  %v714_v42 = vld [vmem:[%s2086_s11 + $0x68] sm:$0xff] }
 0x208   :  { %1177 = vmatpush.msk.msrb.mxu3 %vm235_vm1, %v1678_v44  ;;  %1186 = vmatpush.msk.msrb.mxu2 %vm235_vm1, %v1678_v44  ;;  %v442_v7 = vpack.c.bf16 %v344_v46, %v343_v47  ;;  %v445_v13 = vpack.c.bf16 %v1678_v44, %v1684_v49  ;;  %v712_v44 = vld [vmem:[%s2086_s11 + $0x58] sm:$0xff] }
 0x20a   :  { %380 = vmatpush.msrb.mxu3 %v1684_v49  ;;  %426 = vmatpush.msrb.mxu2 %v1684_v49  ;;  %v711_v49 = vld [vmem:[%s2086_s11 + $0x50] sm:$0xff] }
 0x20c   :  { %381 = vmatpush.msrb.mxu3 %v344_v46  ;;  %427 = vmatpush.msrb.mxu2 %v344_v46  ;;  %v710_v46 = vld [vmem:[%s2086_s11 + $0x48] sm:$0xff] }
 0x20e   :  { %382 = vmatpush.msrb.mxu3 %v343_v47  ;;  %428 = vmatpush.msrb.mxu2 %v343_v47  ;;  %v709_v47 = vld [vmem:[%s2086_s11 + $0x40] sm:$0xff] }
 0x20f   :  { %1178 = vmatmul.msk.f32.vlgmr.msrb.gmra.mxu3 %vm351_vm7, %v347_v48  ;;  %1187 = vmatmul.msk.f32.vlgmr.msrb.gmra.mxu2 %vm351_vm7, %v1182_v51  ;;  %v708_v48 = vld [vmem:[%s2086_s11 + $0x38] sm:$0xff] }
 0x210   :  { %640 = vmatpush.bf16.msra.mxu3 %v1407_v52  ;;  %v707_v52 = vld [vmem:[%s2086_s11 + $0x30] sm:$0xff] }
 0x214   :  { %641 = vmatpush.bf16.msra.mxu3 %v1406_v53 }
 0x217   :  { %1179 = vmatmul.msk.f32.gmra.mxu3 %vm351_vm7, %v348_v54  ;;  %1188 = vmatmul.msk.f32.gmra.mxu2 %vm351_vm7, %v1183_v55  ;;  %v706_v54 = vld [vmem:[%s2086_s11 + $0x28] sm:$0xff]  ;;  %v705_v55 = vld [vmem:[%s2086_s11 + $0x20] sm:$0xff] }
 0x218   :  { %642 = vmatpush.bf16.msra.mxu3 %v1405_v56  ;;  %v704_v56 = vld [vmem:[%s2086_s11 + $0x18] sm:$0xff] }
 0x21c   :  { %643 = vmatpush.bf16.msra.mxu3 %v1404_v57  ;;  %v723_v57 = vpop.permute.xlu0 %722 }
 0x21f   :  { %1180 = vmatmul.msk.f32.gmra.mxu3 %vm351_vm7, %v349_v58  ;;  %1189 = vmatmul.msk.f32.gmra.mxu2 %vm351_vm7, %v1184_v59  ;;  %v703_v58 = vld [vmem:[%s2086_s11 + $0x10] sm:$0xff] }
 0x220   :  { %644 = vmatpush.bf16.msra.mxu3 %v1403_v60  ;;  %v702_v60 = vld [vmem:[%s2086_s11 + $0x8] sm:$0xff] }
 0x224   :  { %645 = vmatpush.bf16.msra.mxu3 %v1402_v62  ;;  %v701_v62 = vld [vmem:[%s2086_s11] sm:$0xff] }
 0x227   :  { %1181 = vmatmul.msk.f32.gmra.mxu3 %vm351_vm7, %v350_v0  ;;  %1190 = vmatmul.msk.f32.gmra.mxu2 %vm351_vm7, %v1185_v1 }
 0x228   :  { %646 = vmatpush.bf16.msra.mxu3 %v1401_v2 }
 0x22c   :  { %647 = vmatpush.bf16.msra.mxu3 %v1400_v4 }
 0x22f   :  { %648 = vmatmul.bf16.vlgmr.msra.gmra.mxu3 %v442_v7 }
 0x230   :  { %678 = vmatpush.bf16.msrb.mxu3 %v1423_v5  ;;  %v728_v5 = vpop.permute.xlu0 %727 }
 0x234   :  { %679 = vmatpush.bf16.msrb.mxu3 %v1422_v8 }
 0x238   :  { %680 = vmatpush.bf16.msrb.mxu3 %v1421_v10 }
 0x23c   :  { %681 = vmatpush.bf16.msrb.mxu3 %v1420_v11 }
 0x23f   :  { %653 = vmatmul.bf16.gmra.mxu3 %v445_v13 }
 0x240   :  { %682 = vmatpush.bf16.msrb.mxu3 %v1419_v12 }
 0x244   :  { %683 = vmatpush.bf16.msrb.mxu3 %v1418_v15 }
 0x248   :  { %684 = vmatpush.bf16.msrb.mxu3 %v1417_v17 }
 0x24c   :  { %685 = vmatpush.bf16.msrb.mxu3 %v1416_v19  ;;  %v738_v19 = vpop.permute.xlu1 %737 }
 0x250   :  { %769 = vmatpush.msra.mxu3 %v716_v40 }
 0x252   :  { %770 = vmatpush.msra.mxu3 %v715_v41 }
 0x254   :  { %771 = vmatpush.msra.mxu3 %v714_v42 }
 0x256   :  { %772 = vmatpush.msra.mxu3 %v713_v43 }
 0x258   :  { %773 = vmatpush.msra.mxu3 %v712_v44 }
 0x25a   :  { %774 = vmatpush.msra.mxu3 %v711_v49 }
 0x25c   :  { %775 = vmatpush.msra.mxu3 %v710_v46  ;;  %v717_v46 = vld [vmem:[%s2087_s12] sm:$0xff] }
 0x25e   :  { %776 = vmatpush.msra.mxu3 %v709_v47  ;;  %v1374_v47 = vld [vmem:[%s2088_s13 + $0xa8] sm:$0xf] }
 0x260   :  { %777 = vmatpush.msra.mxu3 %v708_v48  ;;  %v1446_v48 = vld [vmem:[%s2088_s13 + $0xb0] sm:$0xf0] }
 0x262   :  { %778 = vmatpush.msra.mxu3 %v707_v52  ;;  %v1375_v52 = vor.u32 %v1446_v48, %v1374_v47  ;;  %v1314_v48 = vld [vmem:[%s2088_s13 + $0x30] sm:$0xf] }
 0x264   :  { %779 = vmatpush.msra.mxu3 %v706_v54  ;;  %v1382_v54 = vld [vmem:[%s2088_s13 + $0xb0] sm:$0xf]  ;;  %1025 = vmatpush.bf16.msra.mxu1 %v1375_v52  ;;  %v1430_v52 = vld [vmem:[%s2088_s13 + $0x34] sm:$0xf] }
 0x266   :  { %780 = vmatpush.msra.mxu3 %v705_v55  ;;  %v1447_v55 = vld [vmem:[%s2088_s13 + $0xb8] sm:$0xf0] }
 0x268   :  { %781 = vmatpush.msra.mxu3 %v704_v56 }
 0x26a   :  { %782 = vmatpush.msra.mxu3 %v703_v58  ;;  %v1362_v58 = vld [vmem:[%s2088_s13 + $0x90] sm:$0xf] }
 0x26c   :  { %783 = vmatpush.msra.mxu3 %v702_v60  ;;  %v1442_v60 = vld [vmem:[%s2088_s13 + $0x94] sm:$0xf] }
 0x26e   :  { %784 = vmatpush.msra.mxu3 %v701_v62 }
 0x292   :  { %v384_v22 = vpop.f32.mrf.mxu3  ;;  %v430_v23 = vpop.f32.mrf.mxu2 }
 0x29a   :  { %v387_v26 = vpop.f32.mrf.mxu3  ;;  %v433_v27 = vpop.f32.mrf.mxu2 }
 0x29b   :  { %v443_v29 = vpack.c.bf16 %v387_v26, %v384_v22  ;;  %v444_v30 = vpack.c.bf16 %v433_v27, %v430_v23 }
 0x29d   :  { %667 = vmatmul.bf16.vlgmr.msrb.gmra.mxu1 %v443_v29  ;;  %686 = vmatmul.bf16.vlgmr.msrb.gmra.mxu3 %v444_v30 }
 0x29e   :  { %836 = vmatpush.msrb.mxu3 %v717_v46 }
 0x2a2   :  { %v390_v31 = vpop.f32.mrf.mxu3  ;;  %v436_v32 = vpop.f32.mrf.mxu2 }
 0x2aa   :  { %v393_v33 = vpop.f32.mrf.mxu3  ;;  %v439_v34 = vpop.f32.mrf.mxu2 }
 0x2ab   :  { %v446_v35 = vpack.c.bf16 %v393_v33, %v390_v31  ;;  %v447_v36 = vpack.c.bf16 %v439_v34, %v436_v32 }
 0x2ad   :  { %672 = vmatmul.bf16.gmra.mxu1 %v446_v35  ;;  %691 = vmatmul.bf16.gmra.mxu3 %v447_v36 }
 0x2b2   :  { %v649_v37 = vpop.f32.mrf.mxu3 }
 0x2ba   :  { %v651_v38 = vpop.f32.mrf.mxu3 }
 0x2c2   :  { %v654_v39 = vpop.f32.mrf.mxu3 }
 0x2ca   :  { %v656_v45 = vpop.f32.mrf.mxu3 }
 0x31a   :  { %v668_v50 = vpop.f32.mrf.mxu1 }
 0x31b   :  { %v669_v0 = vadd.f32 %v668_v50, %v649_v37 }
 0x320   :  { %v687_v51 = vpop.f32.mrf.mxu3 }
 0x321   :  { %v1856_v6 = vadd.f32 %v687_v51, %v669_v0  ;;  %v1445_v51 = vld [vmem:[%s2088_s13 + $0xac] sm:$0xf]  ;;  %v1370_v0 = vld [vmem:[%s2088_s13 + $0x98] sm:$0xf] }
 0x322   :  { %v670_v53 = vpop.f32.mrf.mxu1 }
 0x323   :  { %v671_v63 = vadd.f32 %v670_v53, %v651_v38  ;;  %v740_v10 = vmul.f32 %v723_v57, %v1856_v6  ;;  %v1376_v53 = vld [vmem:[%s2088_s13 + $0xb4] sm:$0xf0]  ;;  %v1383_v57 = vor.u32 %v1447_v55, %v1382_v54  ;;  %v1432_v55 = vld [vmem:[%s2088_s13 + $0x40] sm:$0xf0] }
 0x324   :  { %v1379_v56 = vor.u32 %v1445_v51, %v1376_v53  ;;  %v1431_v51 = vld [vmem:[%s2088_s13 + $0x38] sm:$0xf0]  ;;  %v1322_v54 = vld [vmem:[%s2088_s13 + $0x38] sm:$0xf] }
 0x325   :  { %v754_v16 = vmul.f32 %v740_v10, %v1856_v6  ;;  %1063 = vmatpush.bf16.msra.mxu2 %v1383_v57  ;;  %v1315_v53 = vor.u32 %v1431_v51, %v1314_v48  ;;  %v1323_v57 = vor.u32 %v1432_v55, %v1322_v54 }
 0x326   :  { %1044 = vmatpush.bf16.msrb.mxu0 %v1379_v56 }
 0x328   :  { %v689_v59 = vpop.f32.mrf.mxu3 }
 0x329   :  { %v1854_v1 = vadd.f32 %v689_v59, %v671_v63  ;;  %v1443_v59 = vld [vmem:[%s2088_s13 + $0x98] sm:$0xf0]  ;;  %v1364_v63 = vld [vmem:[%s2088_s13 + $0x9c] sm:$0xf0] }
 0x32a   :  { %v673_v61 = vpop.f32.mrf.mxu1  ;;  %v1363_v62 = vor.u32 %v1443_v59, %v1362_v58  ;;  %v1302_v58 = vld [vmem:[%s2088_s13 + $0x18] sm:$0xf]  ;;  %v1428_v59 = vld [vmem:[%s2088_s13 + $0x20] sm:$0xf0] }
 0x32b   :  { %v674_v2 = vadd.f32 %v673_v61, %v654_v39  ;;  %v741_v8 = vmul.f32 %v728_v5, %v1854_v1 }
 0x32c   :  { %1026 = vmatpush.bf16.msra.mxu1 %v1363_v62  ;;  %v1304_v62 = vld [vmem:[%s2088_s13 + $0x24] sm:$0xf0] }
 0x32d   :  { %v755_v13 = vmul.f32 %v741_v8, %v1854_v1  ;;  %v744_v17 = vadd.f32 %v741_v8, %v740_v10  ;;  %v1350_v8 = vld [vmem:[%s2088_s13 + $0x78] sm:$0xf]  ;;  %v1439_v10 = vld [vmem:[%s2088_s13 + $0x7c] sm:$0xf] }
 0x32f   :  { %v758_v21 = vadd.f32 %v755_v13, %v754_v16 }
 0x330   :  { %v692_v4 = vpop.f32.mrf.mxu3 }
 0x331   :  { %v1858_v7 = vadd.f32 %v692_v4, %v674_v2  ;;  %v1444_v2 = vld [vmem:[%s2088_s13 + $0xa0] sm:$0xf0]  ;;  %v1367_v4 = vor.u32 %v1442_v60, %v1364_v63  ;;  %v1427_v60 = vld [vmem:[%s2088_s13 + $0x1c] sm:$0xf]  ;;  %v1310_v63 = vld [vmem:[%s2088_s13 + $0x20] sm:$0xf] }
 0x332   :  { %v675_v9 = vpop.f32.mrf.mxu1  ;;  %v1371_v5 = vor.u32 %v1444_v2, %v1370_v0  ;;  %v1429_v0 = vld [vmem:[%s2088_s13 + $0x28] sm:$0xf0]  ;;  %v1307_v2 = vor.u32 %v1427_v60, %v1304_v62 }
 0x333   :  { %v742_v11 = vmul.f32 %v733_v3, %v1858_v7  ;;  %v676_v12 = vadd.f32 %v675_v9, %v656_v45  ;;  %v1440_v9 = vld [vmem:[%s2088_s13 + $0x80] sm:$0xf0]  ;;  %1045 = vmatpush.bf16.msrb.mxu0 %v1367_v4  ;;  %v1290_v4 = vld [vmem:[%s2088_s13] sm:$0xf] }
 0x334   :  { %v1351_v16 = vor.u32 %v1440_v9, %v1350_v8  ;;  %1064 = vmatpush.bf16.msra.mxu2 %v1371_v5  ;;  %v1425_v5 = vld [vmem:[%s2088_s13 + $0x8] sm:$0xf0]  ;;  %v1424_v8 = vld [vmem:[%s2088_s13 + $0x4] sm:$0xf] }
 0x335   :  { %v756_v18 = vmul.f32 %v742_v11, %v1858_v7  ;;  %v745_v22 = vadd.f32 %v744_v17, %v742_v11  ;;  %v1352_v11 = vld [vmem:[%s2088_s13 + $0x84] sm:$0xf0]  ;;  %v1338_v17 = vld [vmem:[%s2088_s13 + $0x60] sm:$0xf]  ;;  %v1291_v9 = vor.u32 %v1425_v5, %v1290_v4 }
 0x336   :  { %1027 = vmatpush.bf16.msra.mxu1 %v1351_v16 }
 0x337   :  { %v759_v25 = vadd.f32 %v758_v21, %v756_v18  ;;  %v1437_v21 = vld [vmem:[%s2088_s13 + $0x68] sm:$0xf0] }
 0x338   :  { %v694_v14 = vpop.f32.mrf.mxu3 }
 0x339   :  { %v1864_v15 = vadd.f32 %v694_v14, %v676_v12  ;;  %v1358_v12 = vld [vmem:[%s2088_s13 + $0x80] sm:$0xf]  ;;  %v1441_v14 = vld [vmem:[%s2088_s13 + $0x88] sm:$0xf0] }
 0x33b   :  { %v743_v20 = vmul.f32 %v738_v19, %v1864_v15  ;;  %v1355_v19 = vor.u32 %v1439_v10, %v1352_v11  ;;  %v1292_v10 = vld [vmem:[%s2088_s13 + $0xc] sm:$0xf0]  ;;  %v1298_v11 = vld [vmem:[%s2088_s13 + $0x8] sm:$0xf] }
 0x33d   :  { %v746_v23 = vsel %vm235_vm1, %v743_v20, 0.0  ;;  %v757_v24 = vmul.f32 %v743_v20, %v1864_v15  ;;  %v1359_v20 = vor.u32 %v1441_v14, %v1358_v12  ;;  %1046 = vmatpush.bf16.msrb.mxu0 %v1355_v19  ;;  %v1426_v12 = vld [vmem:[%s2088_s13 + $0x10] sm:$0xf0] }
 0x33e   :  { %v747_v26 = vadd.f32 %v746_v23, %v745_v22  ;;  %v1436_v22 = vld [vmem:[%s2088_s13 + $0x64] sm:$0xf]  ;;  %v1340_v23 = vld [vmem:[%s2088_s13 + $0x6c] sm:$0xf0]  ;;  %v1299_v14 = vor.u32 %v1426_v12, %v1298_v11 }
 0x33f   :  { %v760_v27 = vsel %vm235_vm1, %v757_v24, 0.0  ;;  %v1346_v24 = vld [vmem:[%s2088_s13 + $0x68] sm:$0xf]  ;;  %1065 = vmatpush.bf16.msra.mxu2 %v1359_v20 }
 0x340   :  { %v748_v28 = vrot.slane %v747_v26, 4  ;;  %v761_v29 = vadd.f32 %v760_v27, %v759_v25  ;;  %v1438_v25 = vld [vmem:[%s2088_s13 + $0x70] sm:$0xf0]  ;;  %v1339_v27 = vor.u32 %v1437_v21, %v1338_v17 }
 0x342   :  { %v749_v30 = vadd.f32 %v748_v28, %v747_v26  ;;  %v762_v31 = vrot.slane %v761_v29, 4  ;;  %1028 = vmatpush.bf16.msra.mxu1 %v1339_v27 }
 0x344   :  { %v763_v32 = vadd.f32 %v762_v31, %v761_v29  ;;  %v750_v33 = vrot.slane %v749_v30, 2  ;;  %v1343_v29 = vor.u32 %v1436_v22, %v1340_v23  ;;  %v1326_v31 = vld [vmem:[%s2088_s13 + $0x48] sm:$0xf] }
 0x346   :  { %v751_v34 = vadd.f32 %v750_v33, %v749_v30  ;;  %v764_v35 = vrot.slane %v763_v32, 2  ;;  %v1347_v30 = vor.u32 %v1438_v25, %v1346_v24  ;;  %v1433_v33 = vld [vmem:[%s2088_s13 + $0x4c] sm:$0xf]  ;;  %1047 = vmatpush.bf16.msrb.mxu0 %v1343_v29 }
 0x348   :  { %v752_v36 = vrot.slane %v751_v34, 1  ;;  %v765_v37 = vadd.f32 %v764_v35, %v763_v32  ;;  %v1434_v32 = vld [vmem:[%s2088_s13 + $0x50] sm:$0xf0]  ;;  %v1334_v35 = vld [vmem:[%s2088_s13 + $0x50] sm:$0xf]  ;;  %1066 = vmatpush.bf16.msra.mxu2 %v1347_v30 }
 0x34a   :  { %v766_v38 = vrot.slane %v765_v37, 1  ;;  %v753_v39 = vadd.f32 %v752_v36, %v751_v34  ;;  %v1328_v34 = vld [vmem:[%s2088_s13 + $0x54] sm:$0xf0]  ;;  %v1435_v36 = vld [vmem:[%s2088_s13 + $0x58] sm:$0xf0] }
 0x34c   :  { %v767_v40 = vadd.f32 %v766_v38, %v765_v37  ;;  %v1327_v38 = vor.u32 %v1434_v32, %v1326_v31 }
 0x34e   :  { %v768_v41 = vsel %vm258_vm2, %v753_v39, %v767_v40  ;;  %v1331_v39 = vor.u32 %v1433_v33, %v1328_v34  ;;  %v1335_v40 = vor.u32 %v1435_v36, %v1334_v35  ;;  %1029 = vmatpush.bf16.msra.mxu1 %v1327_v38 }
 0x34f   :  { %785 = vmatmul.f32.vlgmr.msra.gmra.mxu3 %v768_v41  ;;  %v718_v41 = vld [vmem:[%s2089_s9] sm:$0x1] }
 0x350   :  { %1048 = vmatpush.bf16.msrb.mxu0 %v1331_v39  ;;  %1067 = vmatpush.bf16.msra.mxu2 %v1335_v40 }
 0x352   :  { %1030 = vmatpush.bf16.msra.mxu1 %v1315_v53 }
 0x354   :  { %1068 = vmatpush.bf16.msra.mxu2 %v1323_v57 }
 0x3d2   :  { %v786_v42 = vpop.f32.mrf.mxu3 }
 0x3d3   :  { %v1873_v43 = vmul.f32 0.0034722222, %v786_v42 }
 0x3d5   :  { %v790_v44 = vmul.f32 %v1873_v43, %v1873_v43 }
 0x3d7   :  { %v792_v45 = vrot.slane %v790_v44, 7 }
 0x3d9   :  { %v794_v49 = vsub.f32 %v1873_v43, %v792_v45  ;;  %v719_v45 = vld [vmem:[%s2090_s10] sm:$0x1] }
 0x3db   :  { %v795_v50 = vadd.f32 1e-05, %v794_v49 }
 0x3dd   :  { %1453 = vrsqrt.f32 %v795_v50  ;;  %vm802_vm9 = vweird.f32 %v795_v50 }
 0x3e3   :  { %v1454_v61 = vpop.eup %1453 }
 0x3e4   :  { %v797_v3 = vmul.f32 %v1454_v61, %v795_v50  ;;  %vm803_vm8 = vweird.f32 %v1454_v61 }
 0x3e5   :  { %vm804_vm10 = vmor %vm802_vm9, %vm803_vm8 }
 0x3e6   :  { %v798_v13 = vmul.f32 %v1454_v61, %v797_v3  ;;  %v1311_v3 = vor.u32 %v1429_v0, %v1310_v63 }
 0x3e8   :  { %v799_v18 = vmul.f32 0.5, %v798_v13  ;;  %1069 = vmatpush.bf16.msra.mxu2 %v1311_v3  ;;  %v1295_v13 = vor.u32 %v1424_v8, %v1292_v10 }
 0x3ea   :  { %v800_v26 = vsub.f32 1.5, %v799_v18 }
 0x3ec   :  { %v801_v28 = vmul.f32 %v1454_v61, %v800_v26  ;;  %1070 = vmatpush.bf16.msra.mxu2 %v1299_v14 }
 0x3ee   :  { %v805_v37 = vsel %vm804_vm10, %v1454_v61, %v801_v28  ;;  %v1303_v61 = vor.u32 %v1428_v59, %v1302_v58 }
 0x3ef   :  { %807 = vst [vmem:[#allocation1] sm:$0xff] %v805_v37 }
 0x3f0   :  { %1031 = vmatpush.bf16.msra.mxu1 %v1303_v61 }
 0x3f4   :  { %1032 = vmatpush.bf16.msra.mxu1 %v1291_v9 }
 0x3f6   :  { %v809_v42 = vld [vmem:[#allocation1 + $0x1] ss:$9 sm:$0xff] }
 0x3f7   :  { %v811_v44 = vmul.f32 %v809_v42, %v718_v41 }
 0x3f9   :  { %v812_v49 = vmul.f32 %v811_v44, %v1873_v43  ;;  %v1316_v43 = vld [vmem:[%s2088_s13 + $0x3c] sm:$0xf0] }
 0x3fa   :  { %v1319_v56 = vor.u32 %v1430_v52, %v1316_v43 }
 0x3fb   :  { %v813_v50 = vsub.f32 %v719_v45, %v812_v49 }
 0x3fc   :  { %1049 = vmatpush.bf16.msrb.mxu0 %v1319_v56 }
 0x3fd   :  { %v815_v46 = vperm.slane %v813_v50, 0 }
 0x3ff   :  { %v817_v47 = vsel %vm258_vm2, %v811_v44, %v815_v46 }
 0x400   :  { %1287 = vmatmul.msk.f32.vlgmr.msrb.gmra.mxu3 %vm309_vm6, %v817_v47  ;;  %1050 = vmatpush.bf16.msrb.mxu0 %v1307_v2 }
 0x404   :  { %1051 = vmatpush.bf16.msrb.mxu0 %v1295_v13 }
 0x483   :  { %v838_v16 = vpop.f32.mrf.mxu3 }
 0x484   :  { %v841_v17 = vperm.slane %v838_v16, 0  ;;  %v846_v20 = vperm.slane %v838_v16, 1 }
 0x486   :  { %v842_v18 = vmul.f32 %v841_v17, %v1856_v6  ;;  %v843_v19 = vmul.f32 %v841_v17, %v1854_v1  ;;  %v844_v26 = vmul.f32 %v841_v17, %v1858_v7  ;;  %v845_v27 = vmul.f32 %v841_v17, %v1864_v15  ;;  %v889_v1 = vld [vmem:[%s2091_s14] sm:$0x7] }
 0x487   :  { %v891_v32 = vperm.slane %v889_v1, 0  ;;  %v892_v33 = vperm.slane %v889_v1, 1  ;;  %v893_v38 = vperm.slane %v889_v1, 2 }
 0x488   :  { %v847_v21 = vadd.f32 %v846_v20, %v842_v18  ;;  %v848_v22 = vadd.f32 %v846_v20, %v843_v19  ;;  %v849_v28 = vadd.f32 %v846_v20, %v844_v26  ;;  %v850_v29 = vadd.f32 %v846_v20, %v845_v27 }
 0x48a   :  { %v851_v23 = vmax.f32 %v847_v21, 0.0  ;;  %v852_v24 = vmax.f32 %v848_v22, 0.0  ;;  %v853_v30 = vmax.f32 %v849_v28, 0.0  ;;  %v854_v31 = vmax.f32 %v850_v29, 0.0 }
 0x48c   :  { %v855_v25 = vpack.c.bf16 %v852_v24, %v851_v23  ;;  %v856_v6 = vpack.c.bf16 %v854_v31, %v853_v30 }
 0x48e   :  { %1033 = vmatmul.bf16.vlgmr.msra.gmra.mxu1 %v855_v25  ;;  %1052 = vmatmul.bf16.vlgmr.msrb.gmra.mxu0 %v855_v25 }
 0x48f   :  { %1071 = vmatmul.bf16.vlgmr.msra.gmra.mxu2 %v855_v25 }
 0x49e   :  { %1038 = vmatmul.bf16.gmra.mxu1 %v856_v6  ;;  %1057 = vmatmul.bf16.gmra.mxu0 %v856_v6 }
 0x49f   :  { %1076 = vmatmul.bf16.gmra.mxu2 %v856_v6 }
 0x50b   :  { %v1034_v34 = vpop.f32.mrf.mxu1  ;;  %v1053_v35 = vpop.f32.mrf.mxu0 }
 0x50c   :  { %v1035_v36 = vadd.f32 %v1034_v34, %v891_v32  ;;  %v1054_v7 = vadd.f32 %v1053_v35, %v892_v33 }
 0x50e   :  { %v1082_v37 = vmax.f32 %v1035_v36, 0.0  ;;  %v1083_v15 = vmax.f32 %v1054_v7, 0.0 }
 0x510   :  { %1094 = vst [vmem:[%s2092_s15] sm:$0xff] %v1082_v37 }
 0x511   :  { %1095 = vst [vmem:[%s2092_s15 + $0x8] sm:$0xff] %v1083_v15 }
 0x512   :  { %v1072_v39 = vpop.f32.mrf.mxu2 }
 0x513   :  { %v1073_v40 = vadd.f32 %v1072_v39, %v893_v38  ;;  %v1036_v41 = vpop.f32.mrf.mxu1  ;;  %v1055_v42 = vpop.f32.mrf.mxu0 }
 0x514   :  { %v1037_v44 = vadd.f32 %v1036_v41, %v891_v32  ;;  %v1056_v45 = vadd.f32 %v1055_v42, %v892_v33 }
 0x515   :  { %v1084_v49 = vmax.f32 %v1073_v40, 0.0 }
 0x516   :  { %v1085_v50 = vmax.f32 %v1037_v44, 0.0  ;;  %v1086_v46 = vmax.f32 %v1056_v45, 0.0 }
 0x517   :  { %1096 = vst [vmem:[%s2092_s15 + $0x10] sm:$0xff] %v1084_v49 }
 0x518   :  { %1097 = vst [vmem:[%s2092_s15 + $0x18] sm:$0xff] %v1085_v50 }
 0x519   :  { %1098 = vst [vmem:[%s2092_s15 + $0x20] sm:$0xff] %v1086_v46 }
 0x51a   :  { %v1074_v47 = vpop.f32.mrf.mxu2 }
 0x51b   :  { %v1075_v48 = vadd.f32 %v1074_v47, %v893_v38  ;;  %v1039_v51 = vpop.f32.mrf.mxu1  ;;  %v1058_v52 = vpop.f32.mrf.mxu0 }
 0x51c   :  { %v1040_v53 = vadd.f32 %v1039_v51, %v891_v32  ;;  %v1059_v43 = vadd.f32 %v1058_v52, %v892_v33 }
 0x51d   :  { %v1087_v54 = vmax.f32 %v1075_v48, 0.0 }
 0x51e   :  { %v1088_v55 = vmax.f32 %v1040_v53, 0.0  ;;  %v1089_v56 = vmax.f32 %v1059_v43, 0.0 }
 0x51f   :  { %1099 = vst [vmem:[%s2092_s15 + $0x28] sm:$0xff] %v1087_v54 }
 0x520   :  { %1100 = vst [vmem:[%s2092_s15 + $0x30] sm:$0xff] %v1088_v55 }
 0x521   :  { %1101 = vst [vmem:[%s2092_s15 + $0x38] sm:$0xff] %v1089_v56 }
 0x522   :  { %v1077_v57 = vpop.f32.mrf.mxu2 }
 0x523   :  { %v1078_v58 = vadd.f32 %v1077_v57, %v893_v38  ;;  %v1041_v59 = vpop.f32.mrf.mxu1  ;;  %v1060_v60 = vpop.f32.mrf.mxu0 }
 0x524   :  { %v1042_v61 = vadd.f32 %v1041_v59, %v891_v32  ;;  %v1061_v62 = vadd.f32 %v1060_v60, %v892_v33 }
 0x525   :  { %v1090_v63 = vmax.f32 %v1078_v58, 0.0 }
 0x526   :  { %v1091_v0 = vmax.f32 %v1042_v61, 0.0  ;;  %v1092_v2 = vmax.f32 %v1061_v62, 0.0 }
 0x527   :  { %1102 = vst [vmem:[%s2092_s15 + $0x40] sm:$0xff] %v1090_v63 }
 0x528   :  { %1103 = vst [vmem:[%s2092_s15 + $0x48] sm:$0xf] %v1091_v0 }
 0x529   :  { %1104 = vst [vmem:[%s2092_s15 + $0x50] sm:$0xf] %v1092_v2 }
 0x52a   :  { %v1079_v3 = vpop.f32.mrf.mxu2 }
 0x52b   :  { %v1080_v4 = vadd.f32 %v1079_v3, %v893_v38 }
 0x52d   :  { %v1093_v5 = vmax.f32 %v1080_v4, 0.0 }
 0x52f   :  { %1105 = vst [vmem:[%s2092_s15 + $0x58] sm:$0xf] %v1093_v5 }

</bundles_post_ra>
